<compile_context>
chip_gen: v6e
topology: v6e:2x2x1
jax: 0.10.0
libtpu: 0.0.40
codegen_flags: <defaults>
</compile_context>

<pallas_src>
import functools

import numpy as np
import jax
import jax.numpy as jnp
from jax.experimental import pallas as pl
from jax.experimental.pallas import tpu as pltpu


# --------------------------------------------------------------------------
# Pallas kernel: crop + antialiased bicubic resize + hflip for a GROUP of G
# images (channels fused), as two matmul stages:
#   row pass   : t_g = kron(I_C, Wr_g) @ x_g                (C*Hout, Win)
#   column pass: out = [t_0 | ... | t_{G-1}] @ block_diag(WcT_g)
#                                                           (C*Hout, G*Wout)
# The last matmul produces the full lane-dense output slab in one store.
# --------------------------------------------------------------------------
def _resample_group_kernel(x_ref, wrk_ref, wbd_ref, out_ref, *, G):
    # x_ref   : (G, C*Hin, Win)     images, native dtype
    # wrk_ref : (G, C*Hout, C*Hin)  f32 kron(I_C, w_rows) per image
    # wbd_ref : (G*Win, G*Wout)     f32 block-diag column weights (flip folded)
    # out_ref : (C*Hout, G*Wout)    f32
    cols = []
    for g in range(G):  # G small & static -> unrolled
        xg = x_ref[g].astype(jnp.float32)                      # (C*Hin, Win)
        cols.append(jnp.dot(wrk_ref[g], xg,
                            preferred_element_type=jnp.float32))
    t = jnp.concatenate(cols, axis=1) if G > 1 else cols[0]    # (C*Hout, G*Win)
    out_ref[...] = jnp.dot(t, wbd_ref[...],
                           preferred_element_type=jnp.float32)


# --------------------------------------------------------------------------
# Group-size / VMEM budgeting.
# --------------------------------------------------------------------------
def _next_pow2(n):
    return 1 << max(0, (int(n) - 1).bit_length())


def _step_vmem_bytes(G, C, Hin, Win, Hout, Wout, itemsize):
    x = G * C * Hin * Win * itemsize
    wrk = G * (C * Hout) * (C * Hin) * 4
    wbd = (G * Win) * (G * Wout) * 4
    out = (C * Hout) * (G * Wout) * 4
    return 2 * (x + wrk + wbd + out)     # double-buffered input/output pipeline


def _choose_group(B, C, Hin, Win, Hout, Wout, itemsize):
    # Lane-dense output: want G*Wout >= 128 (a full vreg lane span).
    G = max(1, 128 // max(int(Wout), 1))
    # Do not blow tiny batches up by more than ~2x via padding.
    G = min(G, _next_pow2(B))
    # v7x has only 64 MiB physical VMEM: keep the per-step footprint small.
    while G > 1 and _step_vmem_bytes(G, C, Hin, Win, Hout, Wout,
                                     itemsize) > 24 * 2**20:
        G //= 2
    return max(G, 1)


# --------------------------------------------------------------------------
# Device wrapper: out[b, c] = w_rows[b] @ images[b, c] @ w_cols_t[b]
# --------------------------------------------------------------------------
def crop_resize_flip_batch(images, w_rows, w_cols_t):
    """images: (B,C,Hin,Win) any real dtype; w_rows: (B,Hout,Hin) f32 numpy;
       w_cols_t: (B,Win,Wout) f32 numpy (pre-transposed, flip folded in).
       Returns (B,C,Hout,Wout) float32."""
    images = jnp.asarray(images)
    B, C, Hin, Win = images.shape
    w_rows = np.asarray(w_rows, dtype=np.float32)
    w_cols_t = np.asarray(w_cols_t, dtype=np.float32)
    Hout = int(w_rows.shape[1])
    Wout = int(w_cols_t.shape[2])

    G = _choose_group(B, C, Hin, Win, Hout, Wout, images.dtype.itemsize)
    B_pad = ((B + G - 1) // G) * G
    NB = B_pad // G

    # Pad the batch to a whole number of groups (pad slots give zeros, sliced
    # away at the end).
    if B_pad != B:
        pad = B_pad - B
        images = jnp.concatenate(
            [images, jnp.zeros((pad, C, Hin, Win), images.dtype)], axis=0)
        w_rows = np.concatenate(
            [w_rows, np.zeros((pad, Hout, Hin), np.float32)], axis=0)
        w_cols_t = np.concatenate(
            [w_cols_t, np.zeros((pad, Win, Wout), np.float32)], axis=0)

    # (B_pad, C, Hin, Win) -> (NB, G, C*Hin, Win): contiguous (free) reshape.
    x_grp = images.reshape(NB, G, C * Hin, Win)

    # Host-built fused weights (single H2D transfer each).
    wr_kron = np.zeros((B_pad, C * Hout, C * Hin), np.float32)
    for c in range(C):
        wr_kron[:, c * Hout:(c + 1) * Hout, c * Hin:(c + 1) * Hin] = w_rows
    wr_kron = wr_kron.reshape(NB, G, C * Hout, C * Hin)

    wct_grp = w_cols_t.reshape(NB, G, Win, Wout)
    wbd = np.zeros((NB, G * Win, G * Wout), np.float32)
    for g in range(G):
        wbd[:, g * Win:(g + 1) * Win, g * Wout:(g + 1) * Wout] = wct_grp[:, g]

    kernel = functools.partial(_resample_group_kernel, G=G)

    flops = (2 * B_pad * (C * Hout) * (C * Hin) * Win
             + 2 * NB * (C * Hout) * (G * Win) * (G * Wout))
    bytes_accessed = int(x_grp.size * images.dtype.itemsize
                         + wr_kron.size * 4 + wbd.size * 4
                         + NB * (C * Hout) * (G * Wout) * 4)

    need = _step_vmem_bytes(G, C, Hin, Win, Hout, Wout, images.dtype.itemsize)
    vmem_limit = int(min(56 * 2**20, max(32 * 2**20, 2 * need)))

    out = pl.pallas_call(
        kernel,
        out_shape=jax.ShapeDtypeStruct((NB, C * Hout, G * Wout), jnp.float32),
        grid=(NB,),
        in_specs=[
            pl.BlockSpec((None, G, C * Hin, Win), lambda i: (i, 0, 0, 0)),
            pl.BlockSpec((None, G, C * Hout, C * Hin), lambda i: (i, 0, 0, 0)),
            pl.BlockSpec((None, G * Win, G * Wout), lambda i: (i, 0, 0)),
        ],
        out_specs=pl.BlockSpec((None, C * Hout, G * Wout), lambda i: (i, 0, 0)),
        compiler_params=pltpu.CompilerParams(
            dimension_semantics=("parallel",),
            vmem_limit_bytes=vmem_limit),
        cost_estimate=pl.CostEstimate(
            flops=flops, transcendentals=0, bytes_accessed=bytes_accessed),
    )(x_grp, jnp.asarray(wr_kron), jnp.asarray(wbd))

    # Unpack the lane-grouped slab: (NB, C*Hout, G*Wout) -> (B, C, Hout, Wout).
    out = out.reshape(NB, C, Hout, G, Wout)
    out = jnp.transpose(out, (0, 3, 1, 2, 4)).reshape(B_pad, C, Hout, Wout)
    return out[:B]


# --------------------------------------------------------------------------
# Host glue: vectorized bicubic (a=-0.5) antialiased resampling matrices.
# --------------------------------------------------------------------------
def _cubic(x, a=-0.5):
    ax = np.abs(x)
    ax2 = ax * ax
    ax3 = ax2 * ax
    w1 = (a + 2.0) * ax3 - (a + 3.0) * ax2 + 1.0
    w2 = a * ax3 - 5.0 * a * ax2 + 8.0 * a * ax - 4.0 * a
    return np.where(ax <= 1.0, w1, np.where(ax < 2.0, w2, 0.0))


def _resample_matrices(starts, lengths, in_len, out_len):
    """(B, out_len, in_len): crop [start, start+len) then antialiased bicubic.
    Out-of-crop taps dropped + rows renormalized == PIL/torch bicubic applied
    to the already-cropped image.  Vectorized over the batch."""
    starts = np.asarray(starts, np.float64)[:, None, None]
    lengths = np.asarray(lengths, np.float64)[:, None, None]
    scale = lengths / float(out_len)
    fscale = np.maximum(scale, 1.0)                       # antialias widening
    i = np.arange(out_len, dtype=np.float64)[None, :, None]
    k = np.arange(in_len, dtype=np.float64)[None, None, :]
    center = starts + (i + 0.5) * scale
    w = _cubic((k + 0.5 - center) / fscale)
    in_crop = (k >= starts) & (k <= starts + lengths - 1)
    w = np.where(in_crop, w, 0.0)
    w = w / np.maximum(np.sum(w, axis=2, keepdims=True), 1e-12)
    return w.astype(np.float32)


def _build_crop_weights(crops, flips, H, W, out_h, out_w):
    ci = np.array([c[0] for c in crops])
    cj = np.array([c[1] for c in crops])
    ch = np.array([c[2] for c in crops])
    cw = np.array([c[3] for c in crops])
    flips = np.asarray(flips, bool)
    w_rows = _resample_matrices(ci, ch, H, out_h)                    # (B,out_h,H)
    w_cols_t = np.transpose(_resample_matrices(cj, cw, W, out_w), (0, 2, 1))
    # horizontal flip folded into the (pre-transposed) column matrices
    w_cols_t = np.where(flips[:, None, None], w_cols_t[:, :, ::-1], w_cols_t)
    return w_rows, np.ascontiguousarray(w_cols_t.astype(np.float32))


def _np_rng_from_key(key):
    """Host numpy RNG derived from a JAX PRNG key (single tiny D2H copy)."""
    try:
        data = jax.random.key_data(key)
    except Exception:
        data = key
    return np.random.default_rng(np.asarray(data, dtype=np.uint32).tolist())


def _sample_crop_params(rng, B, H, W, min_scale):
    """torchvision RandomResizedCrop.get_params (10-attempt rejection sampling
    + center-crop fallback) and RandomHorizontalFlip, all on the host."""
    log_lo, log_hi = np.log(3.0 / 4.0), np.log(4.0 / 3.0)
    crops, flips = [], []
    area = float(H * W)
    for _ in range(B):
        found = False
        for _ in range(10):
            target_area = area * float(rng.uniform(min_scale, 1.0))
            aspect = float(np.exp(rng.uniform(log_lo, log_hi)))
            w = int(round(np.sqrt(target_area * aspect)))
            h = int(round(np.sqrt(target_area / aspect)))
            if 0 < w <= W and 0 < h <= H:
                i = int(rng.integers(0, H - h + 1))
                j = int(rng.integers(0, W - w + 1))
                found = True
                break
        if not found:
            in_ratio = W / H
            if in_ratio < 3.0 / 4.0:
                w = W
                h = int(round(w / (3.0 / 4.0)))
            elif in_ratio > 4.0 / 3.0:
                h = H
                w = int(round(h * (4.0 / 3.0)))
            else:
                w, h = W, H
            i = (H - h) // 2
            j = (W - w) // 2
        crops.append((i, j, h, w))
        flips.append(bool(rng.random() < 0.5))
    return crops, flips


# --------------------------------------------------------------------------
# MAECollateFunction.forward equivalent.
# --------------------------------------------------------------------------
def mae_collate(batch, key, input_size=16, min_scale=0.2):
    """batch: list of (img(C,H,W) array, label np array, fname str)."""
    images = jnp.stack([img for img, _, _ in batch], axis=0)   # (B, C, H, W)
    B, C, H, W = images.shape
    out_h, out_w = ((input_size, input_size) if isinstance(input_size, int)
                    else tuple(input_size))

    rng = _np_rng_from_key(key)
    crops, flips = _sample_crop_params(rng, B, H, W, min_scale)
    w_rows, w_cols_t = _build_crop_weights(crops, flips, H, W, out_h, out_w)

    view = crop_resize_flip_batch(images, w_rows, w_cols_t)

    # TODO(synk): torch.LongTensor is int64; JAX default x64 is off -> int32.
    labels = jnp.asarray(
        np.concatenate([np.asarray(lbl) for _, lbl, _ in batch], axis=0),
        dtype=jnp.int32)
    fnames = [fname for _, _, fname in batch]   # plain Python passthrough
    return view, labels, fnames


if __name__ == "__main__":
    key = jax.random.PRNGKey(0)
    k_img, k_crop = jax.random.split(key)

    # --- end-to-end MAE collate on a small BRATS-style batch -----------------
    B, C, H, W = 2, 4, 16, 16
    imgs = jax.random.normal(k_img, (B, C, H, W), dtype=jnp.float32)
    batch = [(imgs[b], np.array([b], dtype=np.int64), f"sample_{b}.nii")
             for b in range(B)]
    view, labels, fnames = mae_collate(batch, k_crop, input_size=16, min_scale=0.2)
    jax.block_until_ready(view)
    jax.block_until_ready(labels)
    assert view.shape == (B, C, 16, 16) and view.dtype == jnp.float32
    assert labels.shape == (B,)
    assert fnames == ["sample_0.nii", "sample_1.nii"]
    assert bool(jnp.all(jnp.isfinite(view)))

    # --- numerical check of the kernel against a numpy reference -------------
    def _reference_check(Bt, Ct, Hi, Wi, Ho, Wo, seed):
        rng = np.random.default_rng(seed)
        x = rng.standard_normal((Bt, Ct, Hi, Wi)).astype(np.float32)
        crops_t, flips_t = _sample_crop_params(rng, Bt, Hi, Wi, 0.2)
        wr, wct = _build_crop_weights(crops_t, flips_t, Hi, Wi, Ho, Wo)
        out = np.asarray(crop_resize_flip_batch(jnp.asarray(x), wr, wct))
        ref = np.einsum("boh,bchw,bwq->bcoq", wr, x, wct)
        np.testing.assert_allclose(out, ref, rtol=3e-2, atol=3e-2)

    _reference_check(2, 4, 16, 16, 16, 16, 0)    # small-group path
    _reference_check(10, 4, 16, 16, 16, 16, 1)   # G=8, batch padding, 2 steps

    # --- resampling identity: a constant image stays constant ----------------
    ones_batch = [(jnp.ones((C, H, W), jnp.float32), np.array([b], np.int64),
                   f"o{b}") for b in range(B)]
    view_ones, _, _ = mae_collate(ones_batch, k_crop, input_size=16, min_scale=0.2)
    jax.block_until_ready(view_ones)
    assert np.allclose(np.asarray(view_ones), 1.0, atol=3e-2)

    print("KERNEL_OK")
</pallas_src>

<mosaic_0001>
module attributes {stable_mosaic.version = 11 : i64} {
  func.func @_resample_group_kernel(%arg0: i32, %arg1: memref<1x2x64x16xf32, #tpu.memory_space<vmem>>, %arg2: memref<1x2x64x64xf32, #tpu.memory_space<vmem>>, %arg3: memref<1x32x32xf32, #tpu.memory_space<vmem>>, %arg4: memref<1x64x32xf32, #tpu.memory_space<vmem>>) attributes {dimension_semantics = [#tpu.dimension_semantics<parallel>], iteration_bounds = array<i64: 1>, scalar_prefetch = 0 : i64, scratch_operands = 0 : i64, tpu.core_type = #tpu.core_type<tc>, window_params = [{transform_indices = @transform_0, window_bounds = array<i64: 1, 2, 64, 16>}, {transform_indices = @transform_1, window_bounds = array<i64: 1, 2, 64, 64>}, {transform_indices = @transform_2, window_bounds = array<i64: 1, 32, 32>}, {transform_indices = @transform_3, window_bounds = array<i64: 1, 64, 32>}]} {
    %c0 = arith.constant 0 : index
    %c0_0 = arith.constant 0 : index
    %c0_1 = arith.constant 0 : index
    %c0_2 = arith.constant 0 : index
    %0 = vector.load %arg1[%c0, %c0_0, %c0_1, %c0_2] : memref<1x2x64x16xf32, #tpu.memory_space<vmem>>, vector<1x1x64x16xf32>
    %1 = vector.shape_cast %0 : vector<1x1x64x16xf32> to vector<64x16xf32>
    %c0_3 = arith.constant 0 : index
    %c0_4 = arith.constant 0 : index
    %c0_5 = arith.constant 0 : index
    %c0_6 = arith.constant 0 : index
    %2 = vector.load %arg2[%c0_3, %c0_4, %c0_5, %c0_6] : memref<1x2x64x64xf32, #tpu.memory_space<vmem>>, vector<1x1x64x64xf32>
    %3 = vector.shape_cast %2 : vector<1x1x64x64xf32> to vector<64x64xf32>
    %cst = arith.constant dense<0.000000e+00> : vector<64x16xf32>
    %4 = tpu.matmul %3, %1, %cst {dimension_numbers = #tpu.dot_dimension_numbers<[1], [0], [0], [1], [0, 0, 1, 1], [], []>} : vector<64x64xf32>, vector<64x16xf32>, vector<64x16xf32> -> vector<64x16xf32>
    %c0_7 = arith.constant 0 : index
    %c1 = arith.constant 1 : index
    %c0_8 = arith.constant 0 : index
    %c0_9 = arith.constant 0 : index
    %5 = vector.load %arg1[%c0_7, %c1, %c0_8, %c0_9] : memref<1x2x64x16xf32, #tpu.memory_space<vmem>>, vector<1x1x64x16xf32>
    %6 = vector.shape_cast %5 : vector<1x1x64x16xf32> to vector<64x16xf32>
    %c0_10 = arith.constant 0 : index
    %c1_11 = arith.constant 1 : index
    %c0_12 = arith.constant 0 : index
    %c0_13 = arith.constant 0 : index
    %7 = vector.load %arg2[%c0_10, %c1_11, %c0_12, %c0_13] : memref<1x2x64x64xf32, #tpu.memory_space<vmem>>, vector<1x1x64x64xf32>
    %8 = vector.shape_cast %7 : vector<1x1x64x64xf32> to vector<64x64xf32>
    %cst_14 = arith.constant dense<0.000000e+00> : vector<64x16xf32>
    %9 = tpu.matmul %8, %6, %cst_14 {dimension_numbers = #tpu.dot_dimension_numbers<[1], [0], [0], [1], [0, 0, 1, 1], [], []>} : vector<64x64xf32>, vector<64x16xf32>, vector<64x16xf32> -> vector<64x16xf32>
    %10 = tpu.concatenate %4, %9 in 1 : vector<64x16xf32>, vector<64x16xf32> -> vector<64x32xf32>
    %c0_15 = arith.constant 0 : index
    %c0_16 = arith.constant 0 : index
    %c0_17 = arith.constant 0 : index
    %11 = vector.load %arg3[%c0_15, %c0_16, %c0_17] : memref<1x32x32xf32, #tpu.memory_space<vmem>>, vector<1x32x32xf32>
    %12 = vector.shape_cast %11 : vector<1x32x32xf32> to vector<32x32xf32>
    %cst_18 = arith.constant dense<0.000000e+00> : vector<64x32xf32>
    %13 = tpu.matmul %10, %12, %cst_18 {dimension_numbers = #tpu.dot_dimension_numbers<[1], [0], [0], [1], [0, 0, 1, 1], [], []>} : vector<64x32xf32>, vector<32x32xf32>, vector<64x32xf32> -> vector<64x32xf32>
    %c0_19 = arith.constant 0 : index
    %c0_20 = arith.constant 0 : index
    %c0_21 = arith.constant 0 : index
    %14 = vector.load %arg4[%c0_19, %c0_20, %c0_21] : memref<1x64x32xf32, #tpu.memory_space<vmem>>, vector<1x64x32xf32>
    %15 = vector.shape_cast %14 : vector<1x64x32xf32> to vector<64x32xf32>
    %16 = vector.shape_cast %13 : vector<64x32xf32> to vector<1x64x32xf32>
    tpu.vector_store %arg4[%c0_19, %c0_20, %c0_21], %16 {strides = array<i32>} : memref<1x64x32xf32, #tpu.memory_space<vmem>>, vector<1x64x32xf32>,
    return
  }
  func.func @transform_0(%arg0: i32) -> (i32, i32, i32, i32) {
    %c0_i32 = arith.constant 0 : i32
    %c0_i32_0 = arith.constant 0 : i32
    %c0_i32_1 = arith.constant 0 : i32
    %c0_i32_2 = arith.constant 0 : i32
    return %arg0, %c0_i32, %c0_i32_0, %c0_i32_1 : i32, i32, i32, i32
  }
  func.func @transform_1(%arg0: i32) -> (i32, i32, i32, i32) {
    %c0_i32 = arith.constant 0 : i32
    %c0_i32_0 = arith.constant 0 : i32
    %c0_i32_1 = arith.constant 0 : i32
    %c0_i32_2 = arith.constant 0 : i32
    return %arg0, %c0_i32, %c0_i32_0, %c0_i32_1 : i32, i32, i32, i32
  }
  func.func @transform_2(%arg0: i32) -> (i32, i32, i32) {
    %c0_i32 = arith.constant 0 : i32
    %c0_i32_0 = arith.constant 0 : i32
    %c0_i32_1 = arith.constant 0 : i32
    return %arg0, %c0_i32, %c0_i32_0 : i32, i32, i32
  }
  func.func @transform_3(%arg0: i32) -> (i32, i32, i32) {
    %c0_i32 = arith.constant 0 : i32
    %c0_i32_0 = arith.constant 0 : i32
    %c0_i32_1 = arith.constant 0 : i32
    return %arg0, %c0_i32, %c0_i32_0 : i32, i32, i32
  }
}

</mosaic_0001>

<bundles_post_ra>
// kernel: tpu_custom_call.1
= control target key start
LH: loop header
LB: loop body
LE: loop exit
PB: predicated region body
PF: predicated region fallthrough
CT: control target
= control target key end

     0   :  { %vm30_vm0 = vcmask 523264   ;;  %s663_s28 = smov 16   ;;  %vm339_vm1 = vcmask 130048   ;;  %vm352_vm2 = vcmask 261120   ;;  %s856_s0 = inlined_call_operand.vmem [shape: f32[1,2,64,16], index: 0, kind: input, shape index: {}]   ;;  %s857_s1 = inlined_call_operand.vmem [shape: f32[1,2,64,64], index: 1, kind: input, shape index: {}]   ;;  %s858_s2 = inlined_call_operand.vmem [shape: f32[1,32,32], index: 2, kind: input, shape index: {}]   ;;  %s859_s3 = inlined_call_operand.vmem [shape: f32[1,64,32], index: 3, kind: output, shape index: {}]  }
   0x1   :  { %v509_v0 = vld [vmem:[%s856_s0 + $0x78] sm:$0xff]  ;;  %v508_v1 = vld [vmem:[%s856_s0 + $0x70] sm:$0xff]  ;;  %v507_v2 = vld [vmem:[%s856_s0 + $0x68] sm:$0xff] }
   0x2   :  { %606 = vmatprep.subr.mxu1 %v509_v0  ;;  %v510_v3 = vld [vmem:[%s857_s1 + $0x40] sm:$0xff]  ;;  %v21_v5 = vld [vmem:[%s856_s0 + $0x38] sm:$0xff]  ;;  %v20_v6 = vld [vmem:[%s856_s0 + $0x30] sm:$0xff] }
   0x3   :  { %607 = vmatpush3.msra.mxu1 %v509_v0  ;;  %622 = vmatprep.mubr.msk.f32.mxu1 %vm30_vm0, %v510_v3  ;;  %v506_v4 = vld [vmem:[%s856_s0 + $0x60] sm:$0xff]  ;;  %v505_v7 = vld [vmem:[%s856_s0 + $0x58] sm:$0xff]  ;;  %v19_v8 = vld [vmem:[%s856_s0 + $0x28] sm:$0xff] }
   0x4   :  { %608 = vmatprep.subr.mxu1 %v508_v1  ;;  %578 = vmatprep.subr.mxu0 %v21_v5  ;;  %v504_v9 = vld [vmem:[%s856_s0 + $0x50] sm:$0xff]  ;;  %v18_v10 = vld [vmem:[%s856_s0 + $0x20] sm:$0xff]  ;;  %v503_v11 = vld [vmem:[%s856_s0 + $0x48] sm:$0xff] }
   0x5   :  { %609 = vmatpush3.msra.mxu1 %v508_v1  ;;  %579 = vmatpush3.msra.mxu0 %v21_v5  ;;  %v17_v12 = vld [vmem:[%s856_s0 + $0x18] sm:$0xff]  ;;  %v502_v13 = vld [vmem:[%s856_s0 + $0x40] sm:$0xff]  ;;  %v16_v14 = vld [vmem:[%s856_s0 + $0x10] sm:$0xff] }
   0x6   :  { %610 = vmatprep.subr.mxu1 %v507_v2  ;;  %580 = vmatprep.subr.mxu0 %v20_v6  ;;  %v511_v15 = vld [vmem:[%s857_s1 + $0x48] sm:$0xff]  ;;  %v512_v16 = vld [vmem:[%s857_s1 + $0x50] sm:$0xff]  ;;  %v22_v18 = vld [vmem:[%s857_s1] sm:$0xff] }
   0x7   :  { %611 = vmatpush3.msra.mxu1 %v507_v2  ;;  %581 = vmatpush3.msra.mxu0 %v20_v6  ;;  %v15_v17 = vld [vmem:[%s856_s0 + $0x8] sm:$0xff]  ;;  %v14_v19 = vld [vmem:[%s856_s0] sm:$0xff]  ;;  %v513_v20 = vld [vmem:[%s857_s1 + $0x58] sm:$0xff] }
   0x8   :  { %612 = vmatprep.subr.mxu1 %v506_v4  ;;  %582 = vmatprep.subr.mxu0 %v19_v8  ;;  %v514_v21 = vld [vmem:[%s857_s1 + $0x60] sm:$0xff]  ;;  %v23_v22 = vld [vmem:[%s857_s1 + $0x8] sm:$0xff]  ;;  %v24_v23 = vld [vmem:[%s857_s1 + $0x10] sm:$0xff] }
   0x9   :  { %613 = vmatpush3.msra.mxu1 %v506_v4  ;;  %583 = vmatpush3.msra.mxu0 %v19_v8  ;;  %v515_v24 = vld [vmem:[%s857_s1 + $0x68] sm:$0xff]  ;;  %v516_v25 = vld [vmem:[%s857_s1 + $0x70] sm:$0xff]  ;;  %v25_v26 = vld [vmem:[%s857_s1 + $0x18] sm:$0xff] }
   0xa   :  { %614 = vmatprep.subr.mxu1 %v505_v7  ;;  %584 = vmatprep.subr.mxu0 %v18_v10  ;;  %v26_v27 = vld [vmem:[%s857_s1 + $0x20] sm:$0xff]  ;;  %v517_v28 = vld [vmem:[%s857_s1 + $0x78] sm:$0xff]  ;;  %v27_v29 = vld [vmem:[%s857_s1 + $0x28] sm:$0xff] }
   0xb   :  { %615 = vmatpush3.msra.mxu1 %v505_v7  ;;  %585 = vmatpush3.msra.mxu0 %v18_v10  ;;  %v28_v30 = vld [vmem:[%s857_s1 + $0x30] sm:$0xff]  ;;  %v29_v31 = vld [vmem:[%s857_s1 + $0x38] sm:$0xff]  ;;  %v349_v34 = vld [vmem:[%s858_s2 + $0x8] sm:$0xff] }
   0xc   :  { %616 = vmatprep.subr.mxu1 %v504_v9  ;;  %586 = vmatprep.subr.mxu0 %v17_v12  ;;  %v351_v32 = vld [vmem:[%s858_s2 + $0x18] sm:$0xff]  ;;  %v350_v33 = vld [vmem:[%s858_s2 + $0x10] sm:$0xff]  ;;  %v348_v35 = vld [vmem:[%s858_s2] sm:$0xff] }
   0xd   :  { %617 = vmatpush3.msra.mxu1 %v504_v9  ;;  %587 = vmatpush3.msra.mxu0 %v17_v12 }
   0xe   :  { %618 = vmatprep.subr.mxu1 %v503_v11  ;;  %588 = vmatprep.subr.mxu0 %v16_v14 }
   0xf   :  { %619 = vmatpush3.msra.mxu1 %v503_v11  ;;  %589 = vmatpush3.msra.mxu0 %v16_v14 }
  0x10   :  { %620 = vmatprep.subr.mxu1 %v502_v13  ;;  %590 = vmatprep.subr.mxu0 %v15_v17 }
  0x11   :  { %621 = vmatpush3.msra.mxu1 %v502_v13  ;;  %591 = vmatpush3.msra.mxu0 %v15_v17 }
  0x12   :  { %623 = vmatmul.mubr.msk.f32.vlgmr.msra.gmra.mxu1 %vm30_vm0, %v511_v15  ;;  %594 = vmatprep.mubr.msk.f32.mxu0 %vm30_vm0, %v22_v18 }
  0x13   :  { %625 = vmatprep.mubr.msk.f32.mxu1 %vm30_vm0, %v512_v16  ;;  %592 = vmatprep.subr.mxu0 %v14_v19 }
  0x14   :  { %593 = vmatpush3.msra.mxu0 %v14_v19  ;;  %654 = vmatprep.subr.mxu1 %v351_v32 }
  0x15   :  { %595 = vmatmul.mubr.msk.f32.vlgmr.msra.gmra.mxu0 %vm30_vm0, %v23_v22  ;;  %634 = vmatprep.subr.mxu0 %v351_v32 }
  0x16   :  { %626 = vmatmul.mubr.msk.f32.gmra.mxu1 %vm30_vm0, %v513_v20  ;;  %597 = vmatprep.mubr.msk.f32.mxu0 %vm30_vm0, %v24_v23 }
  0x17   :  { %628 = vmatprep.mubr.msk.f32.mxu1 %vm30_vm0, %v514_v21  ;;  %635 = vmatpush3.msra.mxu0 %v351_v32 }
  0x18   :  { %658 = vmatpush3.msra.mxu1 %v351_v32  ;;  %636 = vmatprep.subr.mxu0 %v350_v33 }
  0x19   :  { %598 = vmatmul.mubr.msk.f32.gmra.mxu0 %vm30_vm0, %v25_v26  ;;  %655 = vmatprep.subr.mxu1 %v350_v33 }
  0x1a   :  { %629 = vmatmul.mubr.msk.f32.gmra.mxu1 %vm30_vm0, %v515_v24  ;;  %600 = vmatprep.mubr.msk.f32.mxu0 %vm30_vm0, %v26_v27 }
  0x1b   :  { %631 = vmatprep.mubr.msk.f32.mxu1 %vm30_vm0, %v516_v25  ;;  %637 = vmatpush3.msra.mxu0 %v350_v33 }
  0x1c   :  { %659 = vmatpush3.msra.mxu1 %v350_v33  ;;  %638 = vmatprep.subr.mxu0 %v349_v34 }
  0x1d   :  { %601 = vmatmul.mubr.msk.f32.gmra.mxu0 %vm30_vm0, %v27_v29  ;;  %656 = vmatprep.subr.mxu1 %v349_v34 }
  0x1e   :  { %632 = vmatmul.mubr.msk.f32.gmra.mxu1 %vm30_vm0, %v517_v28  ;;  %603 = vmatprep.mubr.msk.f32.mxu0 %vm30_vm0, %v28_v30 }
  0x1f   :  { %639 = vmatpush3.msra.mxu0 %v349_v34  ;;  %660 = vmatpush3.msra.mxu1 %v349_v34 }
  0x20   :  { %640 = vmatprep.subr.mxu0 %v348_v35  ;;  %657 = vmatprep.subr.mxu1 %v348_v35 }
  0x21   :  { %604 = vmatmul.mubr.msk.f32.gmra.mxu0 %vm30_vm0, %v29_v31  ;;  %661 = vmatpush3.msra.mxu1 %v348_v35 }
  0x22   :  { %641 = vmatpush3.msra.mxu0 %v348_v35 }
  0xd2   :  { %v624_v36 = vpop.f32.mrf.mxu1 }
  0xd3   :  { %317 = vrot.lane.b32.xlu1 %v624_v36, %s663_s28 }
  0xd4   :  { %v268_v37 = vpop.f32.mrf.mxu1 }
  0xd5   :  { %315 = vrot.lane.b32.xlu0 %v268_v37, %s663_s28  ;;  %v596_v44 = vpop.f32.mrf.mxu0 }
  0xd6   :  { %v627_v38 = vpop.f32.mrf.mxu1 }
  0xd7   :  { %v121_v45 = vpop.f32.mrf.mxu0 }
  0xd8   :  { %v278_v39 = vpop.f32.mrf.mxu1 }
  0xd9   :  { %v599_v46 = vpop.f32.mrf.mxu0 }
  0xda   :  { %v630_v40 = vpop.f32.mrf.mxu1 }
  0xdb   :  { %325 = vrot.lane.b32.xlu1 %v630_v40, %s663_s28  ;;  %v131_v47 = vpop.f32.mrf.mxu0 }
  0xdc   :  { %v288_v41 = vpop.f32.mrf.mxu1 }
  0xdd   :  { %323 = vrot.lane.b32.xlu0 %v288_v41, %s663_s28  ;;  %v602_v48 = vpop.f32.mrf.mxu0 }
  0xde   :  { %v633_v42 = vpop.f32.mrf.mxu1 }
  0xdf   :  { %v141_v53 = vpop.f32.mrf.mxu0 }
  0xe0   :  { %v298_v43 = vpop.f32.mrf.mxu1 }
  0xe1   :  { %319 = vrot.lane.b32.xlu0 %v278_v39, %s663_s28  ;;  %327 = vrot.lane.b32.xlu1 %v298_v43, %s663_s28  ;;  %v605_v54 = vpop.f32.mrf.mxu0 }
  0xe3   :  { %v151_v59 = vpop.f32.mrf.mxu0 }
  0xe5   :  { %321 = vrot.lane.b32.xlu0 %v627_v38, %s663_s28  ;;  %329 = vrot.lane.b32.xlu1 %v633_v42, %s663_s28 }
 0x145   :  { %v318_v49 = vpop.permute.xlu1 %317 }
 0x146   :  { %v341_v52 = vsel %vm339_vm1, %v596_v44, %v318_v49 }
 0x147   :  { %v316_v50 = vpop.permute.xlu0 %315 }
 0x148   :  { %v340_v51 = vsel %vm339_vm1, %v121_v45, %v316_v50 }
 0x149   :  { %642 = vmatprep.mubr.msk.f32.mxu0 %vm352_vm2, %v340_v51 }
 0x14a   :  { %643 = vmatmul.mubr.msk.f32.vlgmr.msra.gmra.mxu0 %vm352_vm2, %v341_v52 }
 0x14d   :  { %v326_v55 = vpop.permute.xlu1 %325 }
 0x14e   :  { %v345_v58 = vsel %vm339_vm1, %v602_v48, %v326_v55 }
 0x14f   :  { %v324_v56 = vpop.permute.xlu0 %323 }
 0x150   :  { %v344_v57 = vsel %vm339_vm1, %v141_v53, %v324_v56 }
 0x151   :  { %648 = vmatprep.mubr.msk.f32.mxu1 %vm352_vm2, %v344_v57 }
 0x152   :  { %649 = vmatmul.mubr.msk.f32.vlgmr.msra.gmra.mxu1 %vm352_vm2, %v345_v58 }
 0x153   :  { %v320_v60 = vpop.permute.xlu0 %319  ;;  %v328_v61 = vpop.permute.xlu1 %327 }
 0x154   :  { %v342_v62 = vsel %vm339_vm1, %v131_v47, %v320_v60  ;;  %v346_v63 = vsel %vm339_vm1, %v151_v59, %v328_v61 }
 0x155   :  { %645 = vmatprep.mubr.msk.f32.mxu0 %vm352_vm2, %v342_v62  ;;  %651 = vmatprep.mubr.msk.f32.mxu1 %vm352_vm2, %v346_v63 }
 0x157   :  { %v322_v0 = vpop.permute.xlu0 %321  ;;  %v330_v1 = vpop.permute.xlu1 %329 }
 0x158   :  { %v343_v2 = vsel %vm339_vm1, %v599_v46, %v322_v0  ;;  %v347_v3 = vsel %vm339_vm1, %v605_v54, %v330_v1 }
 0x159   :  { %646 = vmatmul.mubr.msk.f32.gmra.mxu0 %vm352_vm2, %v343_v2  ;;  %652 = vmatmul.mubr.msk.f32.gmra.mxu1 %vm352_vm2, %v347_v3 }
 0x20a   :  { %v644_v4 = vpop.f32.mrf.mxu0 }
 0x20b   :  { %483 = vst.msk [vmem:[%s859_s3 + $0x8] sm:$0xff] %vm352_vm2, %v644_v4 }
 0x20c   :  { %v443_v5 = vpop.f32.mrf.mxu0 }
 0x20d   :  { %482 = vst.msk [vmem:[%s859_s3] sm:$0xff] %vm352_vm2, %v443_v5 }
 0x212   :  { %v650_v6 = vpop.f32.mrf.mxu1 }
 0x213   :  { %487 = vst.msk [vmem:[%s859_s3 + $0x28] sm:$0xff] %vm352_vm2, %v650_v6 }
 0x214   :  { %v463_v7 = vpop.f32.mrf.mxu1 }
 0x215   :  { %486 = vst.msk [vmem:[%s859_s3 + $0x20] sm:$0xff] %vm352_vm2, %v463_v7 }
 0x219   :  { %v647_v8 = vpop.f32.mrf.mxu0  ;;  %v653_v9 = vpop.f32.mrf.mxu1 }
 0x21a   :  { %485 = vst.msk [vmem:[%s859_s3 + $0x18] sm:$0xff] %vm352_vm2, %v647_v8  ;;  %489 = vst.msk [vmem:[%s859_s3 + $0x38] sm:$0xff] %vm352_vm2, %v653_v9 }
 0x21b   :  { %v453_v10 = vpop.f32.mrf.mxu0  ;;  %v473_v11 = vpop.f32.mrf.mxu1 }
 0x21c   :  { %484 = vst.msk [vmem:[%s859_s3 + $0x10] sm:$0xff] %vm352_vm2, %v453_v10  ;;  %488 = vst.msk [vmem:[%s859_s3 + $0x30] sm:$0xff] %vm352_vm2, %v473_v11 }

</bundles_post_ra>
